<compile_context>
chip_gen: v5e
topology: v5e:2x2
jax: 0.10.0
libtpu: 0.0.40
codegen_flags: <defaults>
</compile_context>

<pallas_src>
import functools

import jax
import jax.numpy as jnp
from jax.experimental import pallas as pl
from jax.experimental.pallas import tpu as pltpu

LANE = 128


def _round_up(n, m):
    return ((n + m - 1) // m) * m


def _cdiv(a, b):
    return -(-a // b)


# ----------------------------------------------------------------------------
# Kernels
# ----------------------------------------------------------------------------
def qnet_kernel(x_ref, w1_ref, b1_ref, w2_ref, b2_ref, w3_ref, b3_ref, o_ref):
    """Fused 3-layer MLP on one (tile_b, obs_dim) batch tile.

    Matmuls accumulate in f32 on the MXU; bias-add + ReLU run in f32 on the
    VPU; intermediates are cast to the (pre-cast) weight dtype only as MXU
    operands.  The input cast happens in-kernel (hidden under DMA/MXU), so
    the wrapper never does a separate HBM cast pass.
    """
    w_dtype = w1_ref.dtype
    x = x_ref[...].astype(w_dtype)

    h1 = jnp.dot(x, w1_ref[...], preferred_element_type=jnp.float32) + b1_ref[...]
    h1 = jnp.maximum(h1, 0.0).astype(w_dtype)

    h2 = jnp.dot(h1, w2_ref[...], preferred_element_type=jnp.float32) + b2_ref[...]
    h2 = jnp.maximum(h2, 0.0).astype(w_dtype)

    o_ref[...] = (
        jnp.dot(h2, w3_ref[...], preferred_element_type=jnp.float32) + b3_ref[...]
    ).astype(o_ref.dtype)


def qnet_argmax_kernel(
    n_actions, x_ref, w1_ref, b1_ref, w2_ref, b2_ref, w3_ref, b3_ref, act_ref, qmax_ref
):
    """Same MLP, but fuses per-row max/argmax over the real action lanes and
    emits only (tile_b, 1) outputs (DQN action selection / serving path)."""
    w_dtype = w1_ref.dtype
    x = x_ref[...].astype(w_dtype)

    h1 = jnp.dot(x, w1_ref[...], preferred_element_type=jnp.float32) + b1_ref[...]
    h1 = jnp.maximum(h1, 0.0).astype(w_dtype)

    h2 = jnp.dot(h1, w2_ref[...], preferred_element_type=jnp.float32) + b2_ref[...]
    h2 = jnp.maximum(h2, 0.0).astype(w_dtype)

    q = jnp.dot(h2, w3_ref[...], preferred_element_type=jnp.float32) + b3_ref[...]

    # Mask the zero-padded action lanes so they can never win the argmax.
    col = jax.lax.broadcasted_iota(jnp.int32, q.shape, 1)
    q_m = jnp.where(col < n_actions, q, -jnp.inf)
    qmax = jnp.max(q_m, axis=-1, keepdims=True)
    # First index attaining the max (matches jnp.argmax tie-breaking).
    idx = jnp.min(
        jnp.where(q_m == qmax, col, jnp.int32(q.shape[-1])), axis=-1, keepdims=True
    )

    act_ref[...] = idx.astype(jnp.int32)
    qmax_ref[...] = qmax.astype(qmax_ref.dtype)


# ----------------------------------------------------------------------------
# Wrappers
# ----------------------------------------------------------------------------
def _batch_tiling(batch, tile_b):
    """Minimal-waste batch tiling.

    Pads the batch only to a multiple of 8, then derives the tile size from
    the tile count (so padding waste is < 8 rows per tile, not up to a full
    tile).  If the whole batch would fit in one tile but has >= 16 rows, use
    2 tiles so the 'parallel' grid axis shards across v7x's two TensorCores.
    """
    padded8 = _round_up(max(batch, 1), 8)
    n_tiles = _cdiv(padded8, tile_b)
    if n_tiles == 1 and padded8 >= 16:
        n_tiles = 2
    tb = _round_up(_cdiv(padded8, n_tiles), 8)
    return tb, tb * n_tiles, n_tiles


def _in_specs(tb, obs_dim, h1, h2, hout):
    # x streams per batch tile; weights/biases use constant index maps so they
    # are DMA'd once and stay VMEM-resident across grid steps.
    return [
        pl.BlockSpec((tb, obs_dim), lambda i: (i, 0)),
        pl.BlockSpec((obs_dim, h1), lambda i: (0, 0)),
        pl.BlockSpec((1, h1), lambda i: (0, 0)),
        pl.BlockSpec((h1, h2), lambda i: (0, 0)),
        pl.BlockSpec((1, h2), lambda i: (0, 0)),
        pl.BlockSpec((h2, hout), lambda i: (0, 0)),
        pl.BlockSpec((1, hout), lambda i: (0, 0)),
    ]


def _flops_bytes(padded_batch, obs_dim, h1, h2, hout, x, params, out_bytes_per_row):
    w_isz = jnp.dtype(params["w1"].dtype).itemsize
    flops = 2 * padded_batch * (obs_dim * h1 + h1 * h2 + h2 * hout)
    bytes_accessed = (
        padded_batch * obs_dim * jnp.dtype(x.dtype).itemsize
        + (params["w1"].size + params["w2"].size + params["w3"].size) * w_isz
        + (params["b1"].size + params["b2"].size + params["b3"].size) * 4
        + padded_batch * out_bytes_per_row
    )
    return flops, bytes_accessed


def qnetwork_forward(x, params, n_actions, *, tile_b=1024):
    """Fused QNetwork forward; returns (batch, n_actions) f32 Q-values."""
    batch, obs_dim = x.shape
    h1 = params["w1"].shape[1]
    h2 = params["w2"].shape[1]
    hout = params["w3"].shape[1]  # round_up(n_actions, 8) -- narrow output slab

    tb, padded_batch, n_tiles = _batch_tiling(batch, tile_b)
    if padded_batch != batch:
        x = jnp.pad(x, ((0, padded_batch - batch), (0, 0)))

    flops, bytes_accessed = _flops_bytes(
        padded_batch, obs_dim, h1, h2, hout, x, params, out_bytes_per_row=hout * 4
    )

    out = pl.pallas_call(
        qnet_kernel,
        out_shape=jax.ShapeDtypeStruct((padded_batch, hout), jnp.float32),
        grid=(n_tiles,),
        in_specs=_in_specs(tb, obs_dim, h1, h2, hout),
        out_specs=pl.BlockSpec((tb, hout), lambda i: (i, 0)),
        compiler_params=pltpu.CompilerParams(
            dimension_semantics=("parallel",),  # batch tiles across TCs on v7x
        ),
        cost_estimate=pl.CostEstimate(
            flops=flops, transcendentals=0, bytes_accessed=bytes_accessed
        ),
    )(x, params["w1"], params["b1"], params["w2"], params["b2"],
      params["w3"], params["b3"])

    # Strip batch padding and the (<=7) zero-padded action lanes.
    return out[:batch, :n_actions]


def qnetwork_select_action(x, params, n_actions, *, tile_b=1024):
    """Fused forward + argmax: returns ((batch,) int32 actions, (batch,) f32 max-Q)."""
    batch, obs_dim = x.shape
    h1 = params["w1"].shape[1]
    h2 = params["w2"].shape[1]
    hout = params["w3"].shape[1]

    tb, padded_batch, n_tiles = _batch_tiling(batch, tile_b)
    if padded_batch != batch:
        x = jnp.pad(x, ((0, padded_batch - batch), (0, 0)))

    flops, bytes_accessed = _flops_bytes(
        padded_batch, obs_dim, h1, h2, hout, x, params, out_bytes_per_row=8
    )

    act, qmax = pl.pallas_call(
        functools.partial(qnet_argmax_kernel, n_actions),
        out_shape=(
            jax.ShapeDtypeStruct((padded_batch, 1), jnp.int32),
            jax.ShapeDtypeStruct((padded_batch, 1), jnp.float32),
        ),
        grid=(n_tiles,),
        in_specs=_in_specs(tb, obs_dim, h1, h2, hout),
        out_specs=[
            pl.BlockSpec((tb, 1), lambda i: (i, 0)),
            pl.BlockSpec((tb, 1), lambda i: (i, 0)),
        ],
        compiler_params=pltpu.CompilerParams(
            dimension_semantics=("parallel",),
        ),
        cost_estimate=pl.CostEstimate(
            flops=flops, transcendentals=0, bytes_accessed=bytes_accessed
        ),
    )(x, params["w1"], params["b1"], params["w2"], params["b2"],
      params["w3"], params["b3"])

    return act[:batch, 0], qmax[:batch, 0]


# ----------------------------------------------------------------------------
# Params
# ----------------------------------------------------------------------------
def init_params(key, obs_dim, n_actions, *, lane_pad=LANE):
    """PyTorch-default Linear init, padded to TPU-friendly widths.

    Hidden dims pad to 128 lanes (120->128, 84->128); the output dim pads only
    to round_up(n_actions, 8) to keep HBM writeback small.  Weights are stored
    transposed vs PyTorch ((in, out)) so the kernel computes y = x @ W + b.
    Padded rows/columns are exactly zero, so the padded network equals the
    unpadded one on the first `n_actions` columns (ReLU preserves zeros).
    """
    true_dims = [(obs_dim, 120), (120, 84), (84, n_actions)]
    pad_out = [
        _round_up(120, lane_pad),
        _round_up(84, lane_pad),
        _round_up(n_actions, 8),
    ]
    pad_in = [obs_dim, pad_out[0], pad_out[1]]

    params = {}
    for i, ((fan_in, fan_out), p_in, p_out) in enumerate(
        zip(true_dims, pad_in, pad_out), start=1
    ):
        key, kw, kb = jax.random.split(key, 3)
        bound = 1.0 / float(fan_in) ** 0.5
        w = jax.random.uniform(kw, (fan_in, fan_out), jnp.float32, -bound, bound)
        b = jax.random.uniform(kb, (1, fan_out), jnp.float32, -bound, bound)
        params[f"w{i}"] = (
            jnp.zeros((p_in, p_out), jnp.float32).at[:fan_in, :fan_out].set(w)
        )
        params[f"b{i}"] = jnp.zeros((1, p_out), jnp.float32).at[:, :fan_out].set(b)
    return params


def prepare_params(params, compute_dtype=jnp.bfloat16):
    """One-time cast of weights to the MXU compute dtype (biases stay f32).

    Do this ONCE (and reuse) instead of casting per forward call, so the
    repeated-call DQN serving pattern pays no extra HBM pass over the weights.
    """
    out = dict(params)
    for k in ("w1", "w2", "w3"):
        out[k] = params[k].astype(compute_dtype)
    return out


def reference_forward(x, params, n_actions):
    """Pure-JAX reference on the *unpadded* sub-weights (original module dims)."""
    w1, b1 = params["w1"][:, :120], params["b1"][:, :120]
    w2, b2 = params["w2"][:120, :84], params["b2"][:, :84]
    w3, b3 = params["w3"][:84, :n_actions], params["b3"][:, :n_actions]
    h1 = jnp.maximum(x @ w1 + b1, 0.0)
    h2 = jnp.maximum(h1 @ w2 + b2, 0.0)
    return h2 @ w3 + b3


if __name__ == "__main__":
    # Small env-like shapes: observation dim 8, 4 discrete actions, batch 2.
    BATCH, OBS_DIM, N_ACTIONS = 2, 8, 4

    key = jax.random.PRNGKey(0)
    key, kx = jax.random.split(key)
    x = jax.random.normal(kx, (BATCH, OBS_DIM), dtype=jnp.float32)
    params_f32 = init_params(key, OBS_DIM, N_ACTIONS)
    params_bf16 = prepare_params(params_f32, jnp.bfloat16)  # cast once, reuse

    # f32 path (small batch -> single grid step).
    out = jax.block_until_ready(qnetwork_forward(x, params_f32, N_ACTIONS))
    ref = reference_forward(x, params_f32, N_ACTIONS)
    assert out.shape == (BATCH, N_ACTIONS)
    assert jnp.allclose(out, ref, atol=1e-4, rtol=1e-4), "f32 mismatch vs reference"

    # Batch-tiled path (grid > 1) with a non-multiple-of-tile batch.
    key, kx2 = jax.random.split(key)
    xb = jax.random.normal(kx2, (300, OBS_DIM), dtype=jnp.float32)
    out_b = jax.block_until_ready(
        qnetwork_forward(xb, params_f32, N_ACTIONS, tile_b=128)
    )
    ref_b = reference_forward(xb, params_f32, N_ACTIONS)
    assert out_b.shape == (300, N_ACTIONS)
    assert jnp.allclose(out_b, ref_b, atol=1e-4, rtol=1e-4), "tiled mismatch"

    # bf16 weight path (v6e/v7x MXU rate, halved weight reads); accumulation,
    # bias-add and ReLU stay f32.
    out_bf16 = jax.block_until_ready(qnetwork_forward(x, params_bf16, N_ACTIONS))
    assert jnp.allclose(out_bf16, ref, atol=5e-2, rtol=5e-2), "bf16 mismatch"

    # Fused argmax serving path (eliminates the Q-slab writeback entirely).
    act, qmx = qnetwork_select_action(xb, params_f32, N_ACTIONS, tile_b=128)
    act = jax.block_until_ready(act)
    assert act.shape == (300,) and qmx.shape == (300,)
    assert jnp.array_equal(act, jnp.argmax(ref_b, axis=-1).astype(jnp.int32)), \
        "argmax mismatch"
    assert jnp.allclose(qmx, jnp.max(ref_b, axis=-1), atol=1e-4, rtol=1e-4), \
        "max-Q mismatch"

    print("KERNEL_OK")
</pallas_src>

<mosaic_0001>
module attributes {stable_mosaic.version = 11 : i64} {
  func.func @qnet_kernel(%arg0: i32, %arg1: memref<8x8xf32, #tpu.memory_space<vmem>>, %arg2: memref<8x128xf32, #tpu.memory_space<vmem>>, %arg3: memref<1x128xf32, #tpu.memory_space<vmem>>, %arg4: memref<128x128xf32, #tpu.memory_space<vmem>>, %arg5: memref<1x128xf32, #tpu.memory_space<vmem>>, %arg6: memref<128x8xf32, #tpu.memory_space<vmem>>, %arg7: memref<1x8xf32, #tpu.memory_space<vmem>>, %arg8: memref<8x8xf32, #tpu.memory_space<vmem>>) attributes {dimension_semantics = [#tpu.dimension_semantics<parallel>], iteration_bounds = array<i64: 1>, scalar_prefetch = 0 : i64, scratch_operands = 0 : i64, tpu.core_type = #tpu.core_type<tc>, window_params = [{transform_indices = @transform_0, window_bounds = array<i64: 8, 8>}, {pipeline_mode = #tpu.pipeline_mode<synchronous>, transform_indices = @transform_1, window_bounds = array<i64: 8, 128>}, {pipeline_mode = #tpu.pipeline_mode<synchronous>, transform_indices = @transform_2, window_bounds = array<i64: 1, 128>}, {pipeline_mode = #tpu.pipeline_mode<synchronous>, transform_indices = @transform_3, window_bounds = array<i64: 128, 128>}, {pipeline_mode = #tpu.pipeline_mode<synchronous>, transform_indices = @transform_4, window_bounds = array<i64: 1, 128>}, {pipeline_mode = #tpu.pipeline_mode<synchronous>, transform_indices = @transform_5, window_bounds = array<i64: 128, 8>}, {pipeline_mode = #tpu.pipeline_mode<synchronous>, transform_indices = @transform_6, window_bounds = array<i64: 1, 8>}, {transform_indices = @transform_7, window_bounds = array<i64: 8, 8>}]} {
    %c0 = arith.constant 0 : index
    %c0_0 = arith.constant 0 : index
    %0 = vector.load %arg1[%c0, %c0_0] : memref<8x8xf32, #tpu.memory_space<vmem>>, vector<8x8xf32>
    %c0_1 = arith.constant 0 : index
    %c0_2 = arith.constant 0 : index
    %1 = vector.load %arg2[%c0_1, %c0_2] : memref<8x128xf32, #tpu.memory_space<vmem>>, vector<8x128xf32>
    %cst = arith.constant dense<0.000000e+00> : vector<8x128xf32>
    %2 = tpu.matmul %0, %1, %cst {dimension_numbers = #tpu.dot_dimension_numbers<[1], [0], [0], [1], [0, 0, 1, 1], [], []>} : vector<8x8xf32>, vector<8x128xf32>, vector<8x128xf32> -> vector<8x128xf32>
    %c0_3 = arith.constant 0 : index
    %c0_4 = arith.constant 0 : index
    %3 = vector.load %arg3[%c0_3, %c0_4] : memref<1x128xf32, #tpu.memory_space<vmem>>, vector<1x128xf32>
    %4 = vector.broadcast %3 : vector<1x128xf32> to vector<8x128xf32>
    %5 = arith.addf %2, %4 : vector<8x128xf32>
    %cst_5 = arith.constant 0.000000e+00 : f32
    %6 = vector.broadcast %cst_5 : f32 to vector<8x128xf32>
    %7 = arith.maximumf %5, %6 : vector<8x128xf32>
    %c0_6 = arith.constant 0 : index
    %c0_7 = arith.constant 0 : index
    %8 = vector.load %arg4[%c0_6, %c0_7] : memref<128x128xf32, #tpu.memory_space<vmem>>, vector<128x128xf32>
    %cst_8 = arith.constant dense<0.000000e+00> : vector<8x128xf32>
    %9 = tpu.matmul %7, %8, %cst_8 {dimension_numbers = #tpu.dot_dimension_numbers<[1], [0], [0], [1], [0, 0, 1, 1], [], []>} : vector<8x128xf32>, vector<128x128xf32>, vector<8x128xf32> -> vector<8x128xf32>
    %c0_9 = arith.constant 0 : index
    %c0_10 = arith.constant 0 : index
    %10 = vector.load %arg5[%c0_9, %c0_10] : memref<1x128xf32, #tpu.memory_space<vmem>>, vector<1x128xf32>
    %11 = vector.broadcast %10 : vector<1x128xf32> to vector<8x128xf32>
    %12 = arith.addf %9, %11 : vector<8x128xf32>
    %cst_11 = arith.constant 0.000000e+00 : f32
    %13 = vector.broadcast %cst_11 : f32 to vector<8x128xf32>
    %14 = arith.maximumf %12, %13 : vector<8x128xf32>
    %c0_12 = arith.constant 0 : index
    %c0_13 = arith.constant 0 : index
    %15 = vector.load %arg6[%c0_12, %c0_13] : memref<128x8xf32, #tpu.memory_space<vmem>>, vector<128x8xf32>
    %cst_14 = arith.constant dense<0.000000e+00> : vector<8x8xf32>
    %16 = tpu.matmul %14, %15, %cst_14 {dimension_numbers = #tpu.dot_dimension_numbers<[1], [0], [0], [1], [0, 0, 1, 1], [], []>} : vector<8x128xf32>, vector<128x8xf32>, vector<8x8xf32> -> vector<8x8xf32>
    %c0_15 = arith.constant 0 : index
    %c0_16 = arith.constant 0 : index
    %17 = vector.load %arg7[%c0_15, %c0_16] : memref<1x8xf32, #tpu.memory_space<vmem>>, vector<1x8xf32>
    %18 = vector.broadcast %17 : vector<1x8xf32> to vector<8x8xf32>
    %19 = arith.addf %16, %18 : vector<8x8xf32>
    %c0_17 = arith.constant 0 : index
    %c0_18 = arith.constant 0 : index
    %20 = vector.load %arg8[%c0_17, %c0_18] : memref<8x8xf32, #tpu.memory_space<vmem>>, vector<8x8xf32>
    tpu.vector_store %arg8[%c0_17, %c0_18], %19 {strides = array<i32>} : memref<8x8xf32, #tpu.memory_space<vmem>>, vector<8x8xf32>,
    return
  }
  func.func @transform_0(%arg0: i32) -> (i32, i32) {
    %c0_i32 = arith.constant 0 : i32
    %c0_i32_0 = arith.constant 0 : i32
    return %arg0, %c0_i32 : i32, i32
  }
  func.func @transform_1(%arg0: i32) -> (i32, i32) {
    %c0_i32 = arith.constant 0 : i32
    %c0_i32_0 = arith.constant 0 : i32
    %c0_i32_1 = arith.constant 0 : i32
    return %c0_i32, %c0_i32_0 : i32, i32
  }
  func.func @transform_2(%arg0: i32) -> (i32, i32) {
    %c0_i32 = arith.constant 0 : i32
    %c0_i32_0 = arith.constant 0 : i32
    %c0_i32_1 = arith.constant 0 : i32
    return %c0_i32, %c0_i32_0 : i32, i32
  }
  func.func @transform_3(%arg0: i32) -> (i32, i32) {
    %c0_i32 = arith.constant 0 : i32
    %c0_i32_0 = arith.constant 0 : i32
    %c0_i32_1 = arith.constant 0 : i32
    return %c0_i32, %c0_i32_0 : i32, i32
  }
  func.func @transform_4(%arg0: i32) -> (i32, i32) {
    %c0_i32 = arith.constant 0 : i32
    %c0_i32_0 = arith.constant 0 : i32
    %c0_i32_1 = arith.constant 0 : i32
    return %c0_i32, %c0_i32_0 : i32, i32
  }
  func.func @transform_5(%arg0: i32) -> (i32, i32) {
    %c0_i32 = arith.constant 0 : i32
    %c0_i32_0 = arith.constant 0 : i32
    %c0_i32_1 = arith.constant 0 : i32
    return %c0_i32, %c0_i32_0 : i32, i32
  }
  func.func @transform_6(%arg0: i32) -> (i32, i32) {
    %c0_i32 = arith.constant 0 : i32
    %c0_i32_0 = arith.constant 0 : i32
    %c0_i32_1 = arith.constant 0 : i32
    return %c0_i32, %c0_i32_0 : i32, i32
  }
  func.func @transform_7(%arg0: i32) -> (i32, i32) {
    %c0_i32 = arith.constant 0 : i32
    %c0_i32_0 = arith.constant 0 : i32
    return %arg0, %c0_i32 : i32, i32
  }
}

</mosaic_0001>

<bundles_post_ra>
// kernel: tpu_custom_call.1
= control target key start
LH: loop header
LB: loop body
LE: loop exit
PB: predicated region body
PF: predicated region fallthrough
CT: control target
= control target key end

     0   :  { %12 = vsyncpa [#allocation3], 0  ;;  %s387_s0 = inlined_call_operand.vmem [shape: f32[8,8], index: 0, kind: input, shape index: {}]   ;;  %s388_s1 = inlined_call_operand.hbm [shape: f32[8,128], index: 1, kind: input, shape index: {}]   ;;  %s389_s2 = inlined_call_operand.vmem [shape: f32[1,128], index: 2, kind: input, shape index: {}]   ;;  %s390_s3 = inlined_call_operand.vmem [shape: f32[128,128], index: 3, kind: input, shape index: {}]   ;;  %s391_s4 = inlined_call_operand.vmem [shape: f32[1,128], index: 4, kind: input, shape index: {}]   ;;  %s392_s5 = inlined_call_operand.vmem [shape: f32[128,8], index: 5, kind: input, shape index: {}]   ;;  %s393_s6 = inlined_call_operand.vmem [shape: f32[1,8], index: 6, kind: input, shape index: {}]   ;;  %s394_s7 = inlined_call_operand.hbm [shape: f32[8,8], index: 7, kind: output, shape index: {}]  }
   0x1   :  { %13 = vsyncpa [#allocation4], 0  ;;  %s21_s26 = sshll.u32 %s388_s1, 4  ;;  %s229_s27 = smov [#allocation2]   ;;  %s22_s26 = int_to_ptr.hbm [resolvable:$true] %s21_s26 }
   0x2   :  { %s23_s28 = sshll.u32 %s229_s27, 4  ;;  %s24_s28 = int_to_ptr.vmem [resolvable:$true] %s23_s28 }
   0x3   :  { %26 = dma.hbm_to_vmem [thread:$0]  %s22_s26, 128, %s24_s28, [#allocation3]  }
   0x4   :  { %225 = dma.done.wait [#allocation3], 128  }
   0x5   :  { %226 = vsyncadd [#allocation3], 4294967168  ;;  %vm47_vm0 = vcmask 64512   ;;  %v42_v0 = vld [vmem:[#allocation2] sm:$0xff]  ;;  %v87_v2 = vld [vmem:[%s390_s3 + $0x78] sm:$0xff]  ;;  %s230_s23 = smov [#allocation5]  }
   0x6   :  { %v41_v1 = vld [vmem:[%s387_s0] sm:$0xff]  ;;  %66 = vmatpush.msra.mxu0 %v42_v0  ;;  %92 = vmatpush.msra.mxu1 %v87_v2  ;;  %v86_v3 = vld [vmem:[%s390_s3 + $0x70] sm:$0xff]  ;;  %v85_v4 = vld [vmem:[%s390_s3 + $0x68] sm:$0xff]  ;;  %s159_s24 = sshll.u32 %s230_s23, 4  ;;  %s161_s27 = sshll.u32 %s394_s7, 4  ;;  %s160_s24 = int_to_ptr.vmem [resolvable:$true] %s159_s24  ;;  %s162_s27 = int_to_ptr.hbm [resolvable:$true] %s161_s27 }
   0x7   :  { %171 = vmatmul.msk.f32.vlgmr.msra.gmra.mxu0 %vm47_vm0, %v41_v1  ;;  %v84_v5 = vld [vmem:[%s390_s3 + $0x60] sm:$0xff]  ;;  %v83_v6 = vld [vmem:[%s390_s3 + $0x58] sm:$0xff]  ;;  %v82_v7 = vld [vmem:[%s390_s3 + $0x50] sm:$0xff] }
   0x8   :  { %93 = vmatpush.msra.mxu1 %v86_v3  ;;  %v81_v8 = vld [vmem:[%s390_s3 + $0x48] sm:$0xff]  ;;  %v80_v9 = vld [vmem:[%s390_s3 + $0x40] sm:$0xff]  ;;  %v79_v10 = vld [vmem:[%s390_s3 + $0x38] sm:$0xff] }
   0x9   :  { %v78_v11 = vld [vmem:[%s390_s3 + $0x30] sm:$0xff]  ;;  %v77_v12 = vld [vmem:[%s390_s3 + $0x28] sm:$0xff]  ;;  %v76_v13 = vld [vmem:[%s390_s3 + $0x20] sm:$0xff] }
   0xa   :  { %94 = vmatpush.msra.mxu1 %v85_v4  ;;  %v75_v14 = vld [vmem:[%s390_s3 + $0x18] sm:$0xff]  ;;  %v74_v15 = vld [vmem:[%s390_s3 + $0x10] sm:$0xff]  ;;  %v73_v16 = vld [vmem:[%s390_s3 + $0x8] sm:$0xff] }
   0xb   :  { %v72_v17 = vld [vmem:[%s390_s3] sm:$0xff]  ;;  %v128_v18 = vld [vmem:[%s392_s5 + $0x78] sm:$0xff]  ;;  %v127_v19 = vld [vmem:[%s392_s5 + $0x70] sm:$0xff] }
   0xc   :  { %95 = vmatpush.msra.mxu1 %v84_v5  ;;  %133 = vmatpush.msra.mxu2 %v128_v18  ;;  %v126_v20 = vld [vmem:[%s392_s5 + $0x68] sm:$0xff]  ;;  %v125_v21 = vld [vmem:[%s392_s5 + $0x60] sm:$0xff]  ;;  %v124_v22 = vld [vmem:[%s392_s5 + $0x58] sm:$0xff] }
   0xd   :  { %v123_v23 = vld [vmem:[%s392_s5 + $0x50] sm:$0xff]  ;;  %v122_v24 = vld [vmem:[%s392_s5 + $0x48] sm:$0xff]  ;;  %v121_v25 = vld [vmem:[%s392_s5 + $0x40] sm:$0xff] }
   0xe   :  { %96 = vmatpush.msra.mxu1 %v83_v6  ;;  %134 = vmatpush.msra.mxu2 %v127_v19  ;;  %v120_v26 = vld [vmem:[%s392_s5 + $0x38] sm:$0xff]  ;;  %v119_v27 = vld [vmem:[%s392_s5 + $0x30] sm:$0xff]  ;;  %v118_v28 = vld [vmem:[%s392_s5 + $0x28] sm:$0xff] }
   0xf   :  { %v117_v29 = vld [vmem:[%s392_s5 + $0x20] sm:$0xff]  ;;  %v116_v30 = vld [vmem:[%s392_s5 + $0x18] sm:$0xff]  ;;  %v115_v35 = vld [vmem:[%s392_s5 + $0x10] sm:$0xff] }
  0x10   :  { %97 = vmatpush.msra.mxu1 %v82_v7  ;;  %135 = vmatpush.msra.mxu2 %v126_v20  ;;  %v174_v31 = vld [vmem:[%s389_s2] ss:$0 sm:$0xff]  ;;  %v114_v36 = vld [vmem:[%s392_s5 + $0x8] sm:$0xff] }
  0x11   :  { %v113_v37 = vld [vmem:[%s392_s5] sm:$0xff] }
  0x12   :  { %98 = vmatpush.msra.mxu1 %v81_v8  ;;  %136 = vmatpush.msra.mxu2 %v125_v21  ;;  %v175_v38 = vld [vmem:[%s391_s4] ss:$0 sm:$0xff] }
  0x13   :  { %v176_v42 = vld [vmem:[%s393_s6] ss:$0 sm:$0xff] }
  0x14   :  { %99 = vmatpush.msra.mxu1 %v80_v9  ;;  %137 = vmatpush.msra.mxu2 %v124_v22 }
  0x16   :  { %100 = vmatpush.msra.mxu1 %v79_v10  ;;  %138 = vmatpush.msra.mxu2 %v123_v23 }
  0x18   :  { %101 = vmatpush.msra.mxu1 %v78_v11  ;;  %139 = vmatpush.msra.mxu2 %v122_v24 }
  0x1a   :  { %102 = vmatpush.msra.mxu1 %v77_v12  ;;  %140 = vmatpush.msra.mxu2 %v121_v25 }
  0x1c   :  { %103 = vmatpush.msra.mxu1 %v76_v13  ;;  %141 = vmatpush.msra.mxu2 %v120_v26 }
  0x1e   :  { %104 = vmatpush.msra.mxu1 %v75_v14  ;;  %142 = vmatpush.msra.mxu2 %v119_v27 }
  0x20   :  { %105 = vmatpush.msra.mxu1 %v74_v15  ;;  %143 = vmatpush.msra.mxu2 %v118_v28 }
  0x22   :  { %106 = vmatpush.msra.mxu1 %v73_v16  ;;  %144 = vmatpush.msra.mxu2 %v117_v29 }
  0x24   :  { %107 = vmatpush.msra.mxu1 %v72_v17  ;;  %145 = vmatpush.msra.mxu2 %v116_v30 }
  0x26   :  { %146 = vmatpush.msra.mxu2 %v115_v35 }
  0x28   :  { %147 = vmatpush.msra.mxu2 %v114_v36 }
  0x2a   :  { %148 = vmatpush.msra.mxu2 %v113_v37 }
  0x84   :  { %v68_v32 = vpop.f32.mrf.mxu0 }
  0x85   :  { %v69_v33 = vadd.f32 %v174_v31, %v68_v32 }
  0x87   :  { %v71_v34 = vmax.f32 %v69_v33, 0.0 }
  0x89   :  { %108 = vmatmul.f32.vlgmr.msra.gmra.mxu1 %v71_v34 }
 0x106   :  { %v109_v39 = vpop.f32.mrf.mxu1 }
 0x107   :  { %v110_v40 = vadd.f32 %v175_v38, %v109_v39 }
 0x109   :  { %v112_v41 = vmax.f32 %v110_v40, 0.0 }
 0x10b   :  { %149 = vmatmul.f32.vlgmr.msra.gmra.mxu2 %v112_v41 }
 0x18e   :  { %v150_v43 = vpop.f32.mrf.mxu2 }
 0x18f   :  { %v151_v44 = vadd.f32 %v176_v42, %v150_v43 }
 0x191   :  { %153 = vst.msk [vmem:[#allocation5] sm:$0xff] %vm47_vm0, %v151_v44 }
 0x192   :  { %164 = dma.vmem_to_hbm [thread:$0]  %s160_s24, 128, %s162_s27, [#allocation4]  }
 0x193   :  { %227 = dma.done.wait [#allocation4], 128  }
 0x194   :  { %228 = vsyncadd [#allocation4], 4294967168 }
 0x195   :  { %169 = vsyncpa [#allocation3], 1 }
 0x196   :  { %170 = vsyncpa [#allocation4], 1 }

</bundles_post_ra>
